<compile_context>
chip_gen: v5e
topology: v5e:2x2
jax: 0.10.0
libtpu: 0.0.40
codegen_flags: <defaults>
</compile_context>

<pallas_src>
import functools

import jax
import jax.numpy as jnp
from jax import lax
from jax.experimental import pallas as pl
from jax.experimental.pallas import tpu as pltpu

_LANE = 128
_SUBLANE = 8


def _dot_attn_kernel(g_ref, l_ref, c_ref, gout_ref, m_sc, d_sc, acc_sc, *,
                     normalize_attn, spatial, block_s, masked_tail):
    """One grid step: bn examples x block_s spatial positions.

    g_ref:    (bn, C)      global features (native dtype)
    l_ref:    (bn, C, bs)  local-feature tile (native dtype, never upcast whole)
    c_ref:    (bn, bs)     attention logits (pre-softmax, as in PyTorch)
    gout_ref: (bn, C)      attended global features (written on last s step)
    m_sc/d_sc:(bn, 1) f32  running max / denominator (online softmax)
    acc_sc:   (bn, C) f32  running weighted sum of l
    """
    s_idx = pl.program_id(1)
    last_s = pl.num_programs(1) - 1

    @pl.when(s_idx == 0)
    def _():
        if normalize_attn:
            m_sc[...] = jnp.full_like(m_sc, -jnp.inf)
            d_sc[...] = jnp.zeros_like(d_sc)
        acc_sc[...] = jnp.zeros_like(acc_sc)

    l = l_ref[...]                               # native dtype (bf16 stays bf16)
    g = g_ref[...].astype(jnp.float32)           # (bn, C)

    if masked_tail:
        # Last spatial block is padded past S: zero the padded lanes of l so
        # stale-VMEM garbage (NaN/Inf) cannot leak into the reductions.
        lane = lax.broadcasted_iota(jnp.int32, (1, block_s), 1)
        valid2 = (s_idx * block_s + lane) < spatial            # (1, bs)
        l = jnp.where(valid2[:, None, :], l, 0)
    else:
        valid2 = None

    # Logits: c[n, s] = sum_c g[n, c] * l[n, c, s]  (VPU mul + sublane reduce,
    # f32 accumulation via dtype promotion -- no full-tile f32 copy of l).
    c = jnp.sum(g[:, :, None] * l, axis=1)       # (bn, bs) f32
    c_ref[...] = c.astype(c_ref.dtype)

    if normalize_attn:
        # Online (flash-style) softmax across spatial blocks.
        c_m = c if valid2 is None else jnp.where(valid2, c, -jnp.inf)
        m_prev = m_sc[...]
        m_new = jnp.maximum(m_prev, jnp.max(c_m, axis=-1, keepdims=True))
        alpha = jnp.exp(m_prev - m_new)
        w = jnp.exp(c_m - m_new)                 # f32 weights, kept f32 for the reduce
        d_sc[...] = alpha * d_sc[...] + jnp.sum(w, axis=-1, keepdims=True)
        acc_sc[...] = alpha * acc_sc[...] + jnp.sum(w[:, None, :] * l, axis=2)
        m_sc[...] = m_new
    else:
        w = jax.nn.sigmoid(c)                    # padded lanes contribute 0 (l == 0)
        acc_sc[...] = acc_sc[...] + jnp.sum(w[:, None, :] * l, axis=2)

    @pl.when(s_idx == last_s)
    def _():
        acc = acc_sc[...]
        if normalize_attn:
            acc = acc / d_sc[...]                # exact normalization (free: DMA-bound)
        else:
            acc = acc * (1.0 / float(spatial))   # adaptive_avg_pool2d mean
        gout_ref[...] = acc.astype(gout_ref.dtype)


def _vmem_limit_bytes():
    """Generation-aware scoped-VMEM limit (headroom under physical capacity)."""
    cap = 64 << 20                               # conservative default (v7x physical)
    try:
        cap = int(pltpu.get_tpu_info().vmem_capacity_bytes)
    except Exception:                            # CPU / interpret / old runtime
        pass
    # ~3/4 of physical: 48 MiB on v7x (64 MiB), 96 MiB on v5e/v6e (128 MiB);
    # always >= 32 MiB to override v5e's 16 MiB scoped default.
    return max(32 << 20, min((cap * 3) // 4, 96 << 20))


def _footprint_per_example(c, s, itemsize):
    """Approx. VMEM bytes one example costs per step (full spatial tile).

    Counts the double-buffered l tile AND the f32 broadcast-product
    temporaries the VPU reduces can materialize (+8 B/elem).
    """
    b = c * s * (2 * itemsize + 8)               # l (x2 buffers) + f32 products
    b += s * (2 * itemsize + 8)                  # c out (x2) + f32 logits/weights
    b += c * (4 * itemsize + 4)                  # g in, gout out (x2) + f32 acc
    return b


def _choose_tiling(n, c, s, itemsize, budget):
    """Pick (bn, ts): examples per block and spatial elements per block."""
    bn_fit = max(0, budget // _footprint_per_example(c, s, itemsize))

    if bn_fit >= min(n, _SUBLANE):
        # Common case: keep each example's full spatial extent in one tile.
        if bn_fit >= n:
            bn = n
            if n > _SUBLANE:
                # >= 2 balanced sublane-aligned batch blocks for v7x dual-TC.
                half = -(-n // 2)
                bn = min(n, ((half + _SUBLANE - 1) // _SUBLANE) * _SUBLANE)
        else:
            bn = min(n, max(_SUBLANE, (bn_fit // _SUBLANE) * _SUBLANE))
        return bn, s

    # Fallback (large feature maps): a single example's (C, S) slab cannot be
    # double-buffered -- tile the spatial axis, reduce with online softmax.
    bn = n if n < _SUBLANE else _SUBLANE
    fixed = bn * c * (4 * itemsize + 4)
    per_spatial = bn * (c + 1) * (2 * itemsize + 8)
    ts_fit = (budget - fixed) // max(1, per_spatial)
    ts = max(_LANE, (ts_fit // _LANE) * _LANE)
    return bn, min(ts, s)


def dot_attention_block(l_nchw, g_nc, *, normalize_attn=True, block_spatial=None):
    """Pallas implementation of DotAttentionBlock.forward.

    Args:
      l_nchw: (N, C, W, H) local features.
      g_nc:   (N, C) global feature.
      normalize_attn: softmax+sum (True) or sigmoid+mean (False).
      block_spatial: optional spatial-tile override (test / tuning knob).
    Returns:
      (c, g_out) with c: (N, 1, W, H) attention logits, g_out: (N, C).
    """
    N, C, W, H = l_nchw.shape
    S = W * H
    dtype = l_nchw.dtype
    l_flat = l_nchw.reshape(N, C, S)      # channels -> sublanes, spatial -> lanes

    vmem_limit = _vmem_limit_bytes()
    budget = (vmem_limit * 3) // 4        # leave pipeline/compiler headroom
    bn, ts = _choose_tiling(N, C, S, l_flat.dtype.itemsize, budget)
    if block_spatial is not None:
        ts = min(int(block_spatial), S)
    if ts < S:
        ts = max(_LANE, (ts // _LANE) * _LANE)   # lane-aligned spatial blocks
    masked_tail = (S % ts) != 0

    kernel = functools.partial(
        _dot_attn_kernel, normalize_attn=normalize_attn, spatial=S,
        block_s=ts, masked_tail=masked_tail)

    c_out, g_out = pl.pallas_call(
        kernel,
        out_shape=(
            jax.ShapeDtypeStruct((N, S), dtype),   # lane-dense logits slab
            jax.ShapeDtypeStruct((N, C), dtype),
        ),
        grid_spec=pltpu.PrefetchScalarGridSpec(
            num_scalar_prefetch=0,
            grid=(pl.cdiv(N, bn), pl.cdiv(S, ts)),
            in_specs=[
                pl.BlockSpec((bn, C), lambda n, s: (n, 0)),
                pl.BlockSpec((bn, C, ts), lambda n, s: (n, 0, s)),
            ],
            out_specs=[
                pl.BlockSpec((bn, ts), lambda n, s: (n, s)),
                pl.BlockSpec((bn, C), lambda n, s: (n, 0)),   # resident across s
            ],
            scratch_shapes=[
                pltpu.VMEM((bn, 1), jnp.float32),   # running max
                pltpu.VMEM((bn, 1), jnp.float32),   # running denominator
                pltpu.VMEM((bn, C), jnp.float32),   # weighted-sum accumulator
            ],
        ),
        compiler_params=pltpu.CompilerParams(
            dimension_semantics=("parallel", "arbitrary"),
            vmem_limit_bytes=vmem_limit,
        ),
    )(g_nc, l_flat)

    return c_out.reshape(N, 1, W, H), g_out


def _reference(l_nchw, g_nc, normalize_attn=True):
    """Pure-JAX reference mirroring the PyTorch module."""
    N, C, W, H = l_nchw.shape
    S = W * H
    l_flat = l_nchw.reshape(N, C, S)
    c = jnp.einsum("nc,ncs->ns", g_nc, l_flat)[:, None, :]
    a = jax.nn.softmax(c, axis=2) if normalize_attn else jax.nn.sigmoid(c)
    gated = a * l_flat
    g_out = gated.sum(axis=2) if normalize_attn else gated.mean(axis=2)
    return c.reshape(N, 1, W, H), g_out


if __name__ == "__main__":
    key = jax.random.PRNGKey(0)

    def _run_case(n, c, w, h, dtype=jnp.float32, block_spatial=None,
                  tol_c=1e-4, tol_g=1e-3):
        k1, k2 = jax.random.split(jax.random.fold_in(key, n * 7919 + c * 131 + w))
        l = jax.random.normal(k1, (n, c, w, h), dtype=jnp.float32).astype(dtype)
        g = jax.random.normal(k2, (n, c), dtype=jnp.float32).astype(dtype)
        for normalize in (True, False):
            c_out, g_out = dot_attention_block(
                l, g, normalize_attn=normalize, block_spatial=block_spatial)
            jax.block_until_ready((c_out, g_out))
            c_ref, g_ref = _reference(l.astype(jnp.float32), g.astype(jnp.float32),
                                      normalize_attn=normalize)
            assert c_out.shape == (n, 1, w, h) and g_out.shape == (n, c)
            assert jnp.allclose(c_out.astype(jnp.float32), c_ref,
                                atol=tol_c, rtol=tol_c), ("c", n, c, normalize)
            assert jnp.allclose(g_out.astype(jnp.float32), g_ref,
                                atol=tol_g, rtol=tol_g), ("g", n, c, normalize)

    _run_case(2, 4, 16, 16)                        # tiny batch, single block
    _run_case(24, 8, 8, 8)                         # multi batch-block grid (dual-TC split)
    _run_case(4, 8, 14, 14, block_spatial=128)     # forced spatial tiling + masked tail
    _run_case(4, 8, 16, 16, dtype=jnp.bfloat16,    # bf16 storage, f32 math
              tol_c=3e-2, tol_g=3e-2)
    print("KERNEL_OK")
</pallas_src>

<mosaic_0001>
module attributes {stable_mosaic.version = 11 : i64} {
  func.func @_dot_attn_kernel(%arg0: i32, %arg1: i32, %arg2: memref<2x4xf32, #tpu.memory_space<vmem>>, %arg3: memref<2x4x256xf32, #tpu.memory_space<vmem>>, %arg4: memref<2x256xf32, #tpu.memory_space<vmem>>, %arg5: memref<2x4xf32, #tpu.memory_space<vmem>>, %arg6: memref<2x1xf32, #tpu.memory_space<vmem>>, %arg7: memref<2x1xf32, #tpu.memory_space<vmem>>, %arg8: memref<2x4xf32, #tpu.memory_space<vmem>>) attributes {dimension_semantics = [#tpu.dimension_semantics<parallel>, #tpu.dimension_semantics<arbitrary>], iteration_bounds = array<i64: 1, 1>, scalar_prefetch = 0 : i64, scratch_operands = 3 : i64, tpu.core_type = #tpu.core_type<tc>, window_params = [{transform_indices = @transform_0, window_bounds = array<i64: 2, 4>}, {transform_indices = @transform_1, window_bounds = array<i64: 2, 4, 256>}, {transform_indices = @transform_2, window_bounds = array<i64: 2, 256>}, {transform_indices = @transform_3, window_bounds = array<i64: 2, 4>}]} {
    %c0_i32 = arith.constant 0 : i32
    %0 = arith.cmpi eq, %arg1, %c0_i32 : i32
    %1 = arith.extui %0 : i1 to i32
    %c0_i32_0 = arith.constant 0 : i32
    %2 = arith.cmpi ne, %1, %c0_i32_0 : i32
    scf.if %2 {
      %cst_24 = arith.constant 0xFF800000 : f32
      %38 = vector.broadcast %cst_24 : f32 to vector<2x1xf32>
      %c0_25 = arith.constant 0 : index
      %c0_26 = arith.constant 0 : index
      %39 = vector.load %arg6[%c0_25, %c0_26] : memref<2x1xf32, #tpu.memory_space<vmem>>, vector<2x1xf32>
      tpu.vector_store %arg6[%c0_25, %c0_26], %38 {strides = array<i32>} : memref<2x1xf32, #tpu.memory_space<vmem>>, vector<2x1xf32>,
      %cst_27 = arith.constant 0.000000e+00 : f32
      %40 = vector.broadcast %cst_27 : f32 to vector<2x1xf32>
      %c0_28 = arith.constant 0 : index
      %c0_29 = arith.constant 0 : index
      %41 = vector.load %arg7[%c0_28, %c0_29] : memref<2x1xf32, #tpu.memory_space<vmem>>, vector<2x1xf32>
      tpu.vector_store %arg7[%c0_28, %c0_29], %40 {strides = array<i32>} : memref<2x1xf32, #tpu.memory_space<vmem>>, vector<2x1xf32>,
      %cst_30 = arith.constant 0.000000e+00 : f32
      %42 = vector.broadcast %cst_30 : f32 to vector<2x4xf32>
      %c0_31 = arith.constant 0 : index
      %c0_32 = arith.constant 0 : index
      %43 = vector.load %arg8[%c0_31, %c0_32] : memref<2x4xf32, #tpu.memory_space<vmem>>, vector<2x4xf32>
      tpu.vector_store %arg8[%c0_31, %c0_32], %42 {strides = array<i32>} : memref<2x4xf32, #tpu.memory_space<vmem>>, vector<2x4xf32>,
    } else {
    }
    %c0 = arith.constant 0 : index
    %c0_1 = arith.constant 0 : index
    %c0_2 = arith.constant 0 : index
    %3 = vector.load %arg3[%c0, %c0_1, %c0_2] : memref<2x4x256xf32, #tpu.memory_space<vmem>>, vector<2x4x256xf32>
    %c0_3 = arith.constant 0 : index
    %c0_4 = arith.constant 0 : index
    %4 = vector.load %arg2[%c0_3, %c0_4] : memref<2x4xf32, #tpu.memory_space<vmem>>, vector<2x4xf32>
    %5 = vector.shape_cast %4 : vector<2x4xf32> to vector<2x4x1xf32>
    %6 = vector.broadcast %5 : vector<2x4x1xf32> to vector<2x4x256xf32>
    %7 = arith.mulf %6, %3 : vector<2x4x256xf32>
    %cst = arith.constant dense<0.000000e+00> : vector<2x256xf32>
    %8 = vector.multi_reduction <add>, %7, %cst [1] : vector<2x4x256xf32> to vector<2x256xf32>
    %c0_5 = arith.constant 0 : index
    %c0_6 = arith.constant 0 : index
    %9 = vector.load %arg4[%c0_5, %c0_6] : memref<2x256xf32, #tpu.memory_space<vmem>>, vector<2x256xf32>
    tpu.vector_store %arg4[%c0_5, %c0_6], %8 {strides = array<i32>} : memref<2x256xf32, #tpu.memory_space<vmem>>, vector<2x256xf32>,
    %c0_7 = arith.constant 0 : index
    %c0_8 = arith.constant 0 : index
    %10 = vector.load %arg6[%c0_7, %c0_8] : memref<2x1xf32, #tpu.memory_space<vmem>>, vector<2x1xf32>
    %cst_9 = arith.constant dense<0xFF800000> : vector<2xf32>
    %11 = vector.multi_reduction <maximumf>, %8, %cst_9 [1] : vector<2x256xf32> to vector<2xf32>
    %12 = vector.shape_cast %11 : vector<2xf32> to vector<2x1xf32>
    %13 = arith.maximumf %10, %12 : vector<2x1xf32>
    %14 = arith.subf %10, %13 : vector<2x1xf32>
    %15 = math.exp %14 : vector<2x1xf32>
    %16 = vector.broadcast %13 : vector<2x1xf32> to vector<2x256xf32>
    %17 = arith.subf %8, %16 : vector<2x256xf32>
    %18 = math.exp %17 : vector<2x256xf32>
    %c0_10 = arith.constant 0 : index
    %c0_11 = arith.constant 0 : index
    %19 = vector.load %arg7[%c0_10, %c0_11] : memref<2x1xf32, #tpu.memory_space<vmem>>, vector<2x1xf32>
    %20 = arith.mulf %15, %19 : vector<2x1xf32>
    %cst_12 = arith.constant dense<0.000000e+00> : vector<2xf32>
    %21 = vector.multi_reduction <add>, %18, %cst_12 [1] : vector<2x256xf32> to vector<2xf32>
    %22 = vector.shape_cast %21 : vector<2xf32> to vector<2x1xf32>
    %23 = arith.addf %20, %22 : vector<2x1xf32>
    %c0_13 = arith.constant 0 : index
    %c0_14 = arith.constant 0 : index
    %24 = vector.load %arg7[%c0_13, %c0_14] : memref<2x1xf32, #tpu.memory_space<vmem>>, vector<2x1xf32>
    tpu.vector_store %arg7[%c0_13, %c0_14], %23 {strides = array<i32>} : memref<2x1xf32, #tpu.memory_space<vmem>>, vector<2x1xf32>,
    %c0_15 = arith.constant 0 : index
    %c0_16 = arith.constant 0 : index
    %25 = vector.load %arg8[%c0_15, %c0_16] : memref<2x4xf32, #tpu.memory_space<vmem>>, vector<2x4xf32>
    %26 = vector.broadcast %15 : vector<2x1xf32> to vector<2x4xf32>
    %27 = arith.mulf %26, %25 : vector<2x4xf32>
    %28 = vector.shape_cast %18 : vector<2x256xf32> to vector<2x1x256xf32>
    %29 = vector.broadcast %28 : vector<2x1x256xf32> to vector<2x4x256xf32>
    %30 = arith.mulf %29, %3 : vector<2x4x256xf32>
    %cst_17 = arith.constant dense<0.000000e+00> : vector<2x4xf32>
    %31 = vector.multi_reduction <add>, %30, %cst_17 [2] : vector<2x4x256xf32> to vector<2x4xf32>
    %32 = arith.addf %27, %31 : vector<2x4xf32>
    %c0_18 = arith.constant 0 : index
    %c0_19 = arith.constant 0 : index
    %33 = vector.load %arg8[%c0_18, %c0_19] : memref<2x4xf32, #tpu.memory_space<vmem>>, vector<2x4xf32>
    tpu.vector_store %arg8[%c0_18, %c0_19], %32 {strides = array<i32>} : memref<2x4xf32, #tpu.memory_space<vmem>>, vector<2x4xf32>,
    %c0_20 = arith.constant 0 : index
    %c0_21 = arith.constant 0 : index
    %34 = vector.load %arg6[%c0_20, %c0_21] : memref<2x1xf32, #tpu.memory_space<vmem>>, vector<2x1xf32>
    tpu.vector_store %arg6[%c0_20, %c0_21], %13 {strides = array<i32>} : memref<2x1xf32, #tpu.memory_space<vmem>>, vector<2x1xf32>,
    %c0_i32_22 = arith.constant 0 : i32
    %35 = arith.cmpi eq, %arg1, %c0_i32_22 : i32
    %36 = arith.extui %35 : i1 to i32
    %c0_i32_23 = arith.constant 0 : i32
    %37 = arith.cmpi ne, %36, %c0_i32_23 : i32
    scf.if %37 {
      %c0_24 = arith.constant 0 : index
      %c0_25 = arith.constant 0 : index
      %38 = vector.load %arg8[%c0_24, %c0_25] : memref<2x4xf32, #tpu.memory_space<vmem>>, vector<2x4xf32>
      %c0_26 = arith.constant 0 : index
      %c0_27 = arith.constant 0 : index
      %39 = vector.load %arg7[%c0_26, %c0_27] : memref<2x1xf32, #tpu.memory_space<vmem>>, vector<2x1xf32>
      %40 = vector.broadcast %39 : vector<2x1xf32> to vector<2x4xf32>
      %41 = arith.divf %38, %40 : vector<2x4xf32>
      %c0_28 = arith.constant 0 : index
      %c0_29 = arith.constant 0 : index
      %42 = vector.load %arg5[%c0_28, %c0_29] : memref<2x4xf32, #tpu.memory_space<vmem>>, vector<2x4xf32>
      tpu.vector_store %arg5[%c0_28, %c0_29], %41 {strides = array<i32>} : memref<2x4xf32, #tpu.memory_space<vmem>>, vector<2x4xf32>,
    } else {
    }
    return
  }
  func.func @transform_0(%arg0: i32, %arg1: i32) -> (i32, i32) {
    %c0_i32 = arith.constant 0 : i32
    %c0_i32_0 = arith.constant 0 : i32
    return %arg0, %c0_i32 : i32, i32
  }
  func.func @transform_1(%arg0: i32, %arg1: i32) -> (i32, i32, i32) {
    %c0_i32 = arith.constant 0 : i32
    %c0_i32_0 = arith.constant 0 : i32
    return %arg0, %c0_i32, %arg1 : i32, i32, i32
  }
  func.func @transform_2(%arg0: i32, %arg1: i32) -> (i32, i32) {
    %c0_i32 = arith.constant 0 : i32
    return %arg0, %arg1 : i32, i32
  }
  func.func @transform_3(%arg0: i32, %arg1: i32) -> (i32, i32) {
    %c0_i32 = arith.constant 0 : i32
    %c0_i32_0 = arith.constant 0 : i32
    return %arg0, %c0_i32 : i32, i32
  }
}

</mosaic_0001>

<bundles_post_ra>
// kernel: tpu_custom_call.1
= control target key start
LH: loop header
LB: loop body
LE: loop exit
PB: predicated region body
PF: predicated region fallthrough
CT: control target
= control target key end

     0   :  { %9 = vsyncpa [#allocation6], 0  ;;  %s501_s0 = inlined_call_operand.hbm [shape: f32[2,4], index: 0, kind: input, shape index: {}]   ;;  %s502_s1 = inlined_call_operand.hbm [shape: f32[2,4,256], index: 1, kind: input, shape index: {}]   ;;  %s503_s2 = inlined_call_operand.hbm [shape: f32[2,256], index: 2, kind: output, shape index: {0}]   ;;  %s504_s3 = inlined_call_operand.hbm [shape: f32[2,4], index: 3, kind: output, shape index: {1}]  }
   0x1   :  { %10 = vsyncpa [#allocation9], 0 }
   0x2   :  { %11 = vsyncpa [#allocation7], 0 }
   0x3   :  { %12 = vsyncpa [#allocation12], 0  ;;  %s18_s14 = sshll.u32 %s501_s0, 4  ;;  %s431_s15 = smov [#allocation5]   ;;  %s19_s14 = int_to_ptr.hbm [resolvable:$true] %s18_s14 }
   0x4   :  { %s20_s16 = sshll.u32 %s431_s15, 4  ;;  %s28_s19 = sshll.u32 %s502_s1, 4  ;;  %s21_s16 = int_to_ptr.vmem [resolvable:$true] %s20_s16  ;;  %s29_s19 = int_to_ptr.hbm [resolvable:$true] %s28_s19 }
   0x5   :  { %23 = dma.hbm_to_vmem [thread:$0]  %s19_s14, 32, %s21_s16, [#allocation6]  }
   0x6   :  { %s432_s20 = smov [#allocation8]   ;;  %s433_s22 = smov 128  }
   0x7   :  { %s30_s21 = sshll.u32 %s432_s20, 4  ;;  %s434_s23 = smov 8   ;;  %s31_s21 = int_to_ptr.vmem [resolvable:$true] %s30_s21 }
   0x8   :  { %36 = dma.hbm_to_vmem [thread:$0]  %s29_s19, 256, %s31_s21, [#allocation9], %s433_s22, %s433_s22, %s434_s23  }
   0x9   :  { %423 = dma.done.wait [#allocation6], 32  }
   0xa   :  { %424 = vsyncadd [#allocation6], 4294967264 }
   0xb   :  { %425 = dma.done.wait [#allocation9], 256  }
   0xc   :  { %426 = vsyncadd [#allocation9], 4294967040  ;;  %v58_v0 = vlaneseq  ;;  %v56_v2 = vld [vmem:[#allocation5] sm:$0x3]  ;;  %v54_v5 = vld [vmem:[#allocation8] sm:$0xff]  ;;  %vm49_vm0 = vcmask 1024  }
   0xd   :  { %v57_v3 = vperm.slane %v56_v2, 0  ;;  %v64_v4 = vperm.slane %v56_v2, 1  ;;  %73 = vst [vmem:[#allocation1] ss:$2 sm:$0xff] %v54_v5  ;;  %v55_v8 = vld [vmem:[#allocation8 + $0x8] sm:$0xff]  ;;  %v435_v11 = vmov -inf  }
   0xe   :  { %v59_v1 = vshrl.u32 %v58_v0, 7  ;;  %77 = vst [vmem:[#allocation1 + $0x10] ss:$2 sm:$0xff] %v55_v8  ;;  %vm88_vm1 = vcmask 1043456   ;;  %vm131_vm2 = vcmask 1041409   ;;  %vm123_vm3 = vcmask 1041408  }
   0xf   :  { %50 = vst.msk [vmem:[#allocation2] sm:$0x3] %vm49_vm0, %v435_v11  ;;  %vm133_vm4 = vcmask 1043459   ;;  %vm135_vm5 = vcmask 1045509   ;;  %vm137_vm6 = vcmask 1047559   ;;  %v436_v60 = vmov 0  }
  0x10   :  { %311 = vset.pattern.permute.xlu0 %v59_v1  ;;  %312 = vset.pattern.permute.xlu1 %v436_v60  ;;  %v437_v61 = vmov 0.0   ;;  %vm52_vm7 = vcmask 25600   ;;  %s275_s24 = sshll.u32 %s503_s2, 4  ;;  %s438_s25 = smov [#allocation10]   ;;  %s276_s24 = int_to_ptr.hbm [resolvable:$true] %s275_s24 }
  0x11   :  { %313 = vset.pattern.permute.xlu2 %v436_v60  ;;  %51 = vst.msk [vmem:[#allocation3] sm:$0x3] %vm49_vm0, %v437_v61  ;;  %s273_s26 = sshll.u32 %s438_s25, 4  ;;  %s439_s2 = smov [#allocation11]   ;;  %s274_s26 = int_to_ptr.vmem [resolvable:$true] %s273_s26 }
  0x12   :  { %53 = vst.msk [vmem:[#allocation4] sm:$0x3] %vm52_vm7, %v437_v61  ;;  %s284_s27 = sshll.u32 %s439_s2, 4  ;;  %s286_s30 = sshll.u32 %s504_s3, 4  ;;  %s285_s27 = int_to_ptr.vmem [resolvable:$true] %s284_s27  ;;  %s287_s30 = int_to_ptr.hbm [resolvable:$true] %s286_s30 }
  0x14   :  { %v74_v6 = vld.sshfl [vmem:[#allocation1] sm:$0xff pattern:$0x75316420]  ;;  %v75_v7 = vld.sshfl [vmem:[#allocation1 + $0x8] sm:$0xff pattern:$0x75316420] }
  0x15   :  { %205 = vst [vmem:[#allocation1] ss:$2 sm:$0xff] %v54_v5  ;;  %v78_v9 = vld.sshfl [vmem:[#allocation1 + $0x10] sm:$0xff pattern:$0x75316420] }
  0x16   :  { %v79_v10 = vld.sshfl [vmem:[#allocation1 + $0x18] sm:$0xff pattern:$0x75316420]  ;;  %v141_v62 = vld [vmem:[#allocation2] sm:$0x3] }
  0x17   :  { %209 = vst [vmem:[#allocation1 + $0x10] ss:$2 sm:$0xff] %v55_v8 }
  0x18   :  { %62 = vperm.xlu0 %311, %v57_v3  }
  0x20   :  { %69 = vperm.xlu0 %311, %v64_v4  }
  0x28   :  { %314 = vset.pattern.permute.xlu0 %v436_v60 }
  0x8a   :  { %v63_v12 = vpop.permute.xlu0 %62 }
  0x8b   :  { %v84_v13 = vmul.f32 %v74_v6, %v63_v12  ;;  %v85_v14 = vmul.f32 %v75_v7, %v63_v12 }
  0x8d   :  { %v89_v15 = vsel %vm88_vm1, %v84_v13, 0.0  ;;  %v96_v16 = vsel %vm88_vm1, %v85_v14, 0.0 }
  0x8e   :  { %v90_v17 = vrot.slane %v89_v15, 4  ;;  %v97_v18 = vrot.slane %v96_v16, 4 }
  0x90   :  { %v91_v19 = vadd.f32 %v90_v17, %v89_v15  ;;  %v98_v20 = vadd.f32 %v97_v18, %v96_v16  ;;  %v206_v16 = vld.sshfl [vmem:[#allocation1] sm:$0xff pattern:$0x75316420] }
  0x92   :  { %v99_v21 = vrot.slane %v98_v20, 2  ;;  %v70_v22 = vpop.permute.xlu0 %69  ;;  %v92_v25 = vrot.slane %v91_v19, 2 }
  0x93   :  { %v86_v23 = vmul.f32 %v78_v9, %v70_v22  ;;  %v87_v24 = vmul.f32 %v79_v10, %v70_v22  ;;  %v210_v22 = vld.sshfl [vmem:[#allocation1 + $0x10] sm:$0xff pattern:$0x75316420] }
  0x94   :  { %v100_v28 = vadd.f32 %v99_v21, %v98_v20  ;;  %v93_v31 = vadd.f32 %v92_v25, %v91_v19  ;;  %v207_v19 = vld.sshfl [vmem:[#allocation1 + $0x8] sm:$0xff pattern:$0x75316420] }
  0x95   :  { %v103_v26 = vsel %vm88_vm1, %v86_v23, 0.0  ;;  %v110_v27 = vsel %vm88_vm1, %v87_v24, 0.0 }
  0x96   :  { %v104_v29 = vrot.slane %v103_v26, 4  ;;  %v111_v30 = vrot.slane %v110_v27, 4  ;;  %v101_v36 = vrot.slane %v100_v28, 1  ;;  %v94_v39 = vrot.slane %v93_v31, 1 }
  0x98   :  { %v105_v32 = vadd.f32 %v104_v29, %v103_v26  ;;  %v112_v33 = vadd.f32 %v111_v30, %v110_v27  ;;  %v102_v40 = vadd.f32 %v101_v36, %v100_v28  ;;  %v95_v43 = vadd.f32 %v94_v39, %v93_v31  ;;  %v211_v27 = vld.sshfl [vmem:[#allocation1 + $0x18] sm:$0xff pattern:$0x75316420] }
  0x9a   :  { %v106_v34 = vrot.slane %v105_v32, 2  ;;  %v113_v35 = vrot.slane %v112_v33, 2  ;;  %v121_v46 = vrot.slane %v102_v40, 6 }
  0x9c   :  { %v107_v37 = vadd.f32 %v106_v34, %v105_v32  ;;  %v114_v38 = vadd.f32 %v113_v35, %v112_v33  ;;  %v124_v55 = vsel %vm123_vm3, %v95_v43, %v121_v46 }
  0x9e   :  { %v108_v41 = vrot.slane %v107_v37, 1  ;;  %v115_v42 = vrot.slane %v114_v38, 1 }
  0xa0   :  { %v109_v44 = vadd.f32 %v108_v41, %v107_v37  ;;  %v116_v45 = vadd.f32 %v115_v42, %v114_v38 }
  0xa2   :  { %v122_v47 = vrot.slane %v116_v45, 6  ;;  %v142_v48 = vsel %vm131_vm2, %v109_v44, %v95_v43  ;;  %v143_v49 = vsel %vm131_vm2, %v116_v45, %v102_v40 }
  0xa3   :  { %v146_v50 = vsel %vm123_vm3, %v142_v48, -inf  ;;  %v147_v51 = vsel %vm123_vm3, %v143_v49, -inf }
  0xa4   :  { %v125_v52 = vsel %vm123_vm3, %v109_v44, %v122_v47  ;;  %v148_v53 = vmax.f32 %v146_v50, %v147_v51 }
  0xa5   :  { %v130_v54 = vrot.slane %v125_v52, 7  ;;  %v233_v52 = vand.u32 127, %v58_v0 }
  0xa6   :  { %149 = vmax.xlane.f32.xlu1 %v148_v53 }
  0xa7   :  { %v132_v56 = vsel %vm131_vm2, %v130_v54, %v124_v55  ;;  %v194_v55 = vld [vmem:[#allocation4] sm:$0x3] }
  0xa8   :  { %v134_v57 = vsel %vm133_vm4, %v130_v54, %v132_v56 }
  0xa9   :  { %v136_v58 = vsel %vm135_vm5, %v130_v54, %v134_v57 }
  0xaa   :  { %v138_v59 = vsel %vm137_vm6, %v130_v54, %v136_v58 }
  0xab   :  { %140 = vst [vmem:[#allocation10] sm:$0xf] %v138_v59 }
  0xac   :  { %278 = dma.vmem_to_hbm [thread:$0]  %s274_s26, 64, %s276_s24, [#allocation7]  }
 0x119   :  { %v150_v63 = vpop.xlane.xlu1 %149 }
 0x11a   :  { %v151_v1 = vmax.f32 %v141_v62, %v150_v63 }
 0x11c   :  { %v152_v2 = vsub.f32 %v141_v62, %v151_v1  ;;  %241 = vst.msk [vmem:[#allocation2] sm:$0x3] %vm49_vm0, %v151_v1  ;;  %157 = vperm.xlu1 %312, %v151_v1  }
 0x11e   :  { %v153_v3 = vmul.f32 1.442695, %v152_v2 }
 0x120   :  { %315 = vpow2.f32 %v153_v3 }
 0x126   :  { %v316_v4 = vpop.eup %315 }
 0x127   :  { %197 = vperm.xlu1 %312, %v316_v4  }
 0x18e   :  { %v158_v5 = vpop.permute.xlu1 %157 }
 0x18f   :  { %v159_v6 = vrot.slane %v158_v5, 1  ;;  %v162_v7 = vsub.f32 %v95_v43, %v158_v5  ;;  %v163_v8 = vsub.f32 %v102_v40, %v158_v5 }
 0x191   :  { %v164_v9 = vsub.f32 %v109_v44, %v159_v6  ;;  %v165_v10 = vsub.f32 %v116_v45, %v159_v6  ;;  %v166_v11 = vmul.f32 1.442695, %v162_v7  ;;  %v168_v12 = vmul.f32 1.442695, %v163_v8  ;;  %v174_v44 = vld [vmem:[#allocation3] sm:$0x3] }
 0x192   :  { %v175_v45 = vmul.f32 %v316_v4, %v174_v44 }
 0x193   :  { %317 = vpow2.f32 %v166_v11  ;;  %v170_v13 = vmul.f32 1.442695, %v164_v9  ;;  %v172_v14 = vmul.f32 1.442695, %v165_v10 }
 0x194   :  { %319 = vpow2.f32 %v168_v12 }
 0x195   :  { %321 = vpow2.f32 %v170_v13 }
 0x196   :  { %323 = vpow2.f32 %v172_v14 }
 0x199   :  { %v318_v15 = vpop.eup %317  ;;  %v198_v56 = vpop.permute.xlu1 %197 }
 0x19a   :  { %v320_v17 = vpop.eup %319  ;;  %v201_v18 = vperm.slane %v318_v15, 0  ;;  %v200_v60 = vmul.f32 %v198_v56, %v194_v55 }
 0x19b   :  { %v322_v20 = vpop.eup %321  ;;  %v202_v21 = vperm.slane %v320_v17, 0 }
 0x19c   :  { %v324_v23 = vpop.eup %323  ;;  %v216_v24 = vmul.f32 %v206_v16, %v201_v18  ;;  %v180_v25 = vrot.slane %v322_v20, 7  ;;  %v203_v26 = vperm.slane %v322_v20, 0 }
 0x19d   :  { %v217_v28 = vmul.f32 %v207_v19, %v202_v21  ;;  %v182_v29 = vrot.slane %v324_v23, 7  ;;  %v204_v30 = vperm.slane %v324_v23, 0 }
 0x19e   :  { %v220_v31 = vsel %vm88_vm1, %v216_v24, 0.0  ;;  %v181_v32 = vsel %vm131_vm2, %v180_v25, %v318_v15  ;;  %v218_v33 = vmul.f32 %v210_v22, %v203_v26 }
 0x19f   :  { %v221_v34 = vsel %vm88_vm1, %v217_v28, 0.0  ;;  %v183_v35 = vsel %vm131_vm2, %v182_v29, %v320_v17  ;;  %v186_v36 = vsel %vm123_vm3, %v181_v32, 0.0  ;;  %v219_v37 = vmul.f32 %v211_v27, %v204_v30 }
 0x1a0   :  { %v222_v38 = vadd.f32 %v221_v34, %v220_v31  ;;  %v187_v39 = vsel %vm123_vm3, %v183_v35, 0.0  ;;  %v225_v40 = vsel %vm88_vm1, %v218_v33, 0.0 }
 0x1a1   :  { %v188_v41 = vadd.f32 %v187_v39, %v186_v36  ;;  %v226_v42 = vsel %vm88_vm1, %v219_v37, 0.0 }
 0x1a2   :  { %223 = vadd.xlane.f32.xlu0 %v222_v38  ;;  %v227_v43 = vadd.f32 %v226_v42, %v225_v40 }
 0x1a3   :  { %189 = vadd.xlane.f32.xlu2 %v188_v41 }
 0x215   :  { %v224_v53 = vpop.xlane.xlu0 %223 }
 0x216   :  { %v190_v46 = vpop.xlane.xlu2 %189  ;;  %v234_v58 = vperm.slane %v224_v53, %v233_v52 }
 0x217   :  { %v191_v47 = vadd.f32 %v190_v46, %v175_v45 }
 0x219   :  { %193 = vst.msk [vmem:[#allocation3] sm:$0x3] %vm49_vm0, %v191_v47 }
 0x220   :  { %v246_v48 = vld [vmem:[#allocation3] sm:$0x3] }
 0x221   :  { %249 = vperm.xlu2 %313, %v246_v48  }
 0x24a   :  { %228 = vadd.xlane.f32.xlu2 %v227_v43 }
 0x27b   :  { %v250_v49 = vpop.permute.xlu2 %249 }
 0x27c   :  { %325 = vrcp.f32 %v250_v49  ;;  %v263_v2 = vand.u32 2147483648, %v250_v49  ;;  %vm257_vm9 = vweird.f32 %v250_v49  ;;  %v261_v3 = vand.u32 2147483647, %v250_v49 }
 0x27e   :  { %v264_v4 = vor.u32 1.1754944e-38, %v263_v2  ;;  %vm262_vm11 = vcmp.eq.f32.partialorder %v261_v3, 8.507059e+37 }
 0x282   :  { %v326_v50 = vpop.eup %325 }
 0x283   :  { %v253_v51 = vmul.f32 %v326_v50, %v250_v49  ;;  %vm258_vm8 = vweird.f32 %v326_v50 }
 0x284   :  { %vm259_vm10 = vmor %vm257_vm9, %vm258_vm8 }
 0x285   :  { %v254_v54 = vsub.f32 1.0, %v253_v51 }
 0x287   :  { %v255_v61 = vmul.f32 %v326_v50, %v254_v54 }
 0x289   :  { %v256_v1 = vadd.f32 %v326_v50, %v255_v61 }
 0x28b   :  { %v260_v0 = vsel %vm259_vm10, %v326_v50, %v256_v1 }
 0x28c   :  { %v265_v6 = vsel %vm262_vm11, %v264_v4, %v260_v0 }
 0x2bd   :  { %v229_v57 = vpop.xlane.xlu2 %228 }
 0x2be   :  { %v235_v59 = vperm.slane %v229_v57, %v233_v52 }
 0x2c0   :  { %v236_v62 = vsel %vm131_vm2, %v235_v59, %v234_v58 }
 0x2c1   :  { %v238_v63 = vadd.f32 %v236_v62, %v200_v60 }
 0x2c3   :  { %240 = vst.msk [vmem:[#allocation4] sm:$0x3] %vm52_vm7, %v238_v63 }
 0x2ca   :  { %v245_v5 = vld [vmem:[#allocation4] sm:$0x3] }
 0x2cb   :  { %v266_v7 = vmul.f32 %v265_v6, %v245_v5 }
 0x2cd   :  { %267 = vst.msk [vmem:[#allocation11] sm:$0x3] %vm52_vm7, %v266_v7 }
 0x2ce   :  { %289 = dma.vmem_to_hbm [thread:$0]  %s285_s27, 32, %s287_s30, [#allocation12]  }
 0x2cf   :  { %427 = dma.done.wait [#allocation7], 64  }
 0x2d0   :  { %428 = vsyncadd [#allocation7], 4294967232 }
 0x2d1   :  { %429 = dma.done.wait [#allocation12], 32  }
 0x2d2   :  { %430 = vsyncadd [#allocation12], 4294967264 }
 0x2d3   :  { %298 = vsyncpa [#allocation6], 1 }
 0x2d4   :  { %299 = vsyncpa [#allocation9], 1 }
 0x2d5   :  { %300 = vsyncpa [#allocation7], 1 }
 0x2d6   :  { %301 = vsyncpa [#allocation12], 1 }

</bundles_post_ra>
